<compile_context>
chip_gen: v7x
topology: tpu7x:2x2x1
jax: 0.10.0
libtpu: 0.0.40
codegen_flags: <defaults>
</compile_context>

<pallas_src>
import math

import jax
import jax.numpy as jnp
from jax import lax
from jax.experimental import pallas as pl
from jax.experimental.pallas import tpu as pltpu


_LN_EPS = 1e-12                  # BERT-style LayerNorm epsilon (custom LayerNorm in Bert.py)
_INV_SQRT2 = 1.0 / math.sqrt(2.0)
_NEG_BIG = -1.0e9                # finite "-inf" for padded vocab columns (avoids NaN in LSE)


def _mlm_logprob_kernel(x_ref, w_ref, b_ref, g_ref, bb_ref, embt_ref, obias_ref,
                        out_ref, h_sc, m_sc, s_sc):
    p = pl.program_id(1)          # 0: LSE pass, 1: output pass
    k = pl.program_id(2)          # vocab tile index
    nk = pl.num_programs(2)

    @pl.when(jnp.logical_and(p == 0, k == 0))
    def _():
        # ---- Linear(H->H) + exact (erf) GELU + LayerNorm, once per row tile ----
        h = jnp.dot(x_ref[...], w_ref[...], preferred_element_type=jnp.float32)
        h = h + b_ref[...].astype(jnp.float32)
        h = 0.5 * h * (1.0 + lax.erf(h * _INV_SQRT2))            # torch.nn.GELU() default
        # one-pass mean/var (fewer (tm,H) temporaries / reductions)
        inv_h = 1.0 / h.shape[-1]
        mean = jnp.sum(h, axis=-1, keepdims=True) * inv_h
        var = jnp.sum(h * h, axis=-1, keepdims=True) * inv_h - mean * mean
        var = jnp.maximum(var, 0.0)                              # guard fp cancellation
        h = (h - mean) * lax.rsqrt(var + _LN_EPS)
        h = h * g_ref[...].astype(jnp.float32) + bb_ref[...].astype(jnp.float32)
        h_sc[...] = h.astype(h_sc.dtype)                         # bf16 params -> bf16 MXU
        m_sc[...] = jnp.full(m_sc.shape, -jnp.inf, m_sc.dtype)
        s_sc[...] = jnp.zeros(s_sc.shape, s_sc.dtype)

    # ---- tied-embedding projection for this vocab tile (K-major RHS, no transpose) ----
    logits = jnp.dot(h_sc[...], embt_ref[...], preferred_element_type=jnp.float32)
    logits = logits + obias_ref[...].astype(jnp.float32)

    @pl.when(p == 0)
    def _():
        # online logsumexp over the tiled (padded) vocab axis
        m_prev = m_sc[...]
        m_new = jnp.maximum(m_prev, jnp.max(logits, axis=-1, keepdims=True))
        s_sc[...] = s_sc[...] * jnp.exp(m_prev - m_new) + jnp.sum(
            jnp.exp(logits - m_new), axis=-1, keepdims=True)
        m_sc[...] = m_new

        @pl.when(k == nk - 1)
        def _():
            m_sc[...] = m_sc[...] + jnp.log(s_sc[...])           # m_sc now holds the lse

    @pl.when(p == 1)
    def _():
        out_ref[...] = (logits - m_sc[...]).astype(out_ref.dtype)


def _round_up(n, m):
    return ((n + m - 1) // m) * m


def _block_bytes(shape, dtype):
    r = shape[-2] if len(shape) >= 2 else 1
    c = shape[-1]
    lead = 1
    for d in shape[:-2]:
        lead *= d
    return lead * _round_up(r, 8) * _round_up(c, 128) * jnp.dtype(dtype).itemsize


def _vmem_capacity_bytes():
    # Generation-aware VMEM: 128 MiB on v5e/v6e, 64 MiB per TensorCore on v7x.
    try:
        cap = int(pltpu.get_tpu_info().vmem_capacity_bytes)
        if cap > 0:
            return cap
    except Exception:
        pass
    return 64 << 20          # conservative fallback (smallest of the supported generations)


def _vmem_limit(raw_bytes):
    cap = max(int(_vmem_capacity_bytes() * 0.8), 16 << 20)
    want = int(raw_bytes * 1.4) + (4 << 20)
    return int(min(max(want, 16 << 20), cap))


def mlm_forward(x, w, b, gamma, beta, emb, out_bias, *, row_tile=512, vocab_tile=1024):
    """
    x:        (batch, seq, hidden)
    w:        (hidden, hidden)   -- transposed vs. torch nn.Linear.weight
    b:        (1, hidden)
    gamma:    (1, hidden)        -- LayerNorm weight
    beta:     (1, hidden)        -- LayerNorm bias
    emb:      (vocab, hidden)    -- tied word-embedding table (torch layout)
    out_bias: (1, vocab)
    returns:  (batch, seq, vocab) float32 log-probabilities

    row_tile: raise to 1024 on v5e/v6e if VMEM allows (halves emb table re-streaming);
              keep the row-tile count >= 2 (ideally even) on v7x so both TCs get work.
    """
    B, S, H = x.shape
    V = emb.shape[0]
    M = B * S

    # --- row tiling (pad rows with zeros; outputs sliced off) ---
    tm = _round_up(int(min(row_tile, _round_up(M, 8))), 8)
    M_pad = _round_up(M, tm)

    # --- vocab tiling: 128-multiple tiles, pad the table + bias so any V works ---
    tv = _round_up(int(min(vocab_tile, _round_up(V, 128))), 128)
    V_pad = _round_up(V, tv)
    nv = V_pad // tv
    nr = M_pad // tm

    compute_dtype = emb.dtype    # dtype of the vocab-projection MXU operands

    x2 = x.reshape(M, H)
    if M_pad != M:
        x2 = jnp.pad(x2, ((0, M_pad - M), (0, 0)))

    # One-time K-major transpose of the embedding table (MXU RHS = (K, N) = (H, V_pad)).
    emb_t = jnp.transpose(emb)                                   # (H, V)
    if V_pad != V:
        emb_t = jnp.pad(emb_t, ((0, 0), (0, V_pad - V)))
        # Large negative *finite* pad value: exp(pad - m) underflows to 0 without NaN.
        out_bias = jnp.pad(out_bias, ((0, 0), (0, V_pad - V)), constant_values=_NEG_BIG)

    # Explicit scoped-VMEM budget (weights single-buffered, streamed blocks double-buffered).
    vmem_raw = (
        2 * _block_bytes((tm, H), x2.dtype)
        + 1 * _block_bytes((H, H), w.dtype)
        + 3 * _block_bytes((1, H), b.dtype)
        + 2 * _block_bytes((H, tv), emb_t.dtype)
        + 2 * _block_bytes((1, tv), out_bias.dtype)
        + 2 * _block_bytes((tm, tv), jnp.float32)
        + _block_bytes((tm, H), compute_dtype)
        + 2 * _block_bytes((tm, 1), jnp.float32)
    )

    log_probs = pl.pallas_call(
        _mlm_logprob_kernel,
        out_shape=jax.ShapeDtypeStruct((M_pad, V_pad), jnp.float32),
        grid_spec=pltpu.PrefetchScalarGridSpec(
            num_scalar_prefetch=0,
            grid=(nr, 2, nv),
            in_specs=[
                pl.BlockSpec((tm, H), lambda i, p, k: (i, 0)),                               # x rows
                pl.BlockSpec((H, H), lambda i, p, k: (0, 0), pipeline_mode=pl.Buffered(1)),  # W
                pl.BlockSpec((1, H), lambda i, p, k: (0, 0), pipeline_mode=pl.Buffered(1)),  # b
                pl.BlockSpec((1, H), lambda i, p, k: (0, 0), pipeline_mode=pl.Buffered(1)),  # gamma
                pl.BlockSpec((1, H), lambda i, p, k: (0, 0), pipeline_mode=pl.Buffered(1)),  # beta
                pl.BlockSpec((H, tv), lambda i, p, k: (0, k)),                               # emb^T tile
                pl.BlockSpec((1, tv), lambda i, p, k: (0, k)),                               # out bias tile
            ],
            # During pass 0 the output block index stays (i, 0) -> no garbage writeback;
            # pass 1 writes each (i, k) block exactly once.
            out_specs=pl.BlockSpec((tm, tv), lambda i, p, k: (i, p * k)),
            scratch_shapes=[
                pltpu.VMEM((tm, H), compute_dtype),   # h = LN(GELU(Linear(x)))
                pltpu.VMEM((tm, 1), jnp.float32),     # running max, then logsumexp
                pltpu.VMEM((tm, 1), jnp.float32),     # running sum(exp)
            ],
        ),
        compiler_params=pltpu.CompilerParams(
            dimension_semantics=("parallel", "arbitrary", "arbitrary"),
            vmem_limit_bytes=_vmem_limit(vmem_raw),
        ),
    )(x2, w, b, gamma, beta, emb_t, out_bias)

    return log_probs[:M, :V].reshape(B, S, V)


def mlm_reference(x, w, b, gamma, beta, emb, out_bias):
    """Pure-JAX reference with the module's numerics (f32 accumulation, erf GELU, BERT LN)."""
    B, S, H = x.shape
    V = emb.shape[0]
    x2 = x.reshape(-1, H)
    h = jnp.dot(x2, w, preferred_element_type=jnp.float32) + b.astype(jnp.float32)
    h = 0.5 * h * (1.0 + lax.erf(h * _INV_SQRT2))
    mean = jnp.mean(h, axis=-1, keepdims=True)
    var = jnp.mean(jnp.square(h - mean), axis=-1, keepdims=True)
    h = (h - mean) * lax.rsqrt(var + _LN_EPS)
    h = h * gamma.astype(jnp.float32) + beta.astype(jnp.float32)
    h = h.astype(emb.dtype)
    logits = lax.dot_general(h, emb, (((1,), (1,)), ((), ())),
                             preferred_element_type=jnp.float32)
    logits = logits + out_bias.astype(jnp.float32)
    return jax.nn.log_softmax(logits, axis=-1).reshape(B, S, V)


def init_params(key, vocab_size, hidden_size, dtype=jnp.float32):
    """Deterministic synthetic params (Linear weight stored transposed: (H_in, H_out))."""
    k1, k2, k3, k4, k5, k6 = jax.random.split(key, 6)
    bound = 1.0 / math.sqrt(hidden_size)
    w = jax.random.uniform(k1, (hidden_size, hidden_size), jnp.float32, -bound, bound)
    b = jax.random.uniform(k2, (1, hidden_size), jnp.float32, -bound, bound)
    gamma = 1.0 + 0.1 * jax.random.normal(k3, (1, hidden_size), jnp.float32)
    beta = 0.1 * jax.random.normal(k4, (1, hidden_size), jnp.float32)
    emb = jax.random.normal(k5, (vocab_size, hidden_size), jnp.float32)
    # torch initializes mlm_output_bias to zeros; use nonzero values to exercise the add path.
    out_bias = 0.1 * jax.random.normal(k6, (1, vocab_size), jnp.float32)
    return tuple(p.astype(dtype) for p in (w, b, gamma, beta, emb, out_bias))


if __name__ == "__main__":
    # vocab deliberately NOT a multiple of 128 to exercise the padding/masking path
    batch, seq, hidden, vocab = 2, 8, 32, 500

    key = jax.random.PRNGKey(0)
    kx, kp = jax.random.split(key)
    x = jax.random.normal(kx, (batch, seq, hidden), dtype=jnp.float32)

    # ---- float32 path, small explicit tiles (multi row/vocab tiles + vocab padding) ----
    params = init_params(kp, vocab, hidden, dtype=jnp.float32)
    ref = mlm_reference(x, *params)
    out = jax.block_until_ready(mlm_forward(x, *params, row_tile=8, vocab_tile=128))
    assert out.shape == (batch, seq, vocab)
    assert bool(jnp.allclose(out, ref, atol=1e-4, rtol=1e-4)), "f32 (tiled) mismatch vs reference"

    # ---- float32 path, default tiles (clamped: single row tile, single vocab tile) ----
    out_d = jax.block_until_ready(mlm_forward(x, *params))
    assert bool(jnp.allclose(out_d, ref, atol=1e-4, rtol=1e-4)), "f32 (default) mismatch vs reference"

    # ---- bf16 MXU path (bf16 operands, f32 accumulation) ----
    params_bf16 = init_params(kp, vocab, hidden, dtype=jnp.bfloat16)
    x_bf16 = x.astype(jnp.bfloat16)
    out_bf16 = jax.block_until_ready(
        mlm_forward(x_bf16, *params_bf16, row_tile=8, vocab_tile=128))
    ref_bf16 = mlm_reference(x_bf16, *params_bf16)
    assert bool(jnp.allclose(out_bf16, ref_bf16, atol=5e-2, rtol=5e-2)), "bf16 mismatch vs reference"

    print("KERNEL_OK")
</pallas_src>

<mosaic_0001>
module attributes {stable_mosaic.version = 11 : i64} {
  func.func @_mlm_logprob_kernel(%arg0: i32, %arg1: i32, %arg2: i32, %arg3: memref<8x32xf32, #tpu.memory_space<vmem>>, %arg4: memref<32x32xf32, #tpu.memory_space<vmem>>, %arg5: memref<1x32xf32, #tpu.memory_space<vmem>>, %arg6: memref<1x32xf32, #tpu.memory_space<vmem>>, %arg7: memref<1x32xf32, #tpu.memory_space<vmem>>, %arg8: memref<32x128xf32, #tpu.memory_space<vmem>>, %arg9: memref<1x128xf32, #tpu.memory_space<vmem>>, %arg10: memref<8x128xf32, #tpu.memory_space<vmem>>, %arg11: memref<8x32xf32, #tpu.memory_space<vmem>>, %arg12: memref<8x1xf32, #tpu.memory_space<vmem>>, %arg13: memref<8x1xf32, #tpu.memory_space<vmem>>) attributes {dimension_semantics = [#tpu.dimension_semantics<parallel>, #tpu.dimension_semantics<arbitrary>, #tpu.dimension_semantics<arbitrary>], iteration_bounds = array<i64: 2, 2, 4>, scalar_prefetch = 0 : i64, scratch_operands = 3 : i64, tpu.core_type = #tpu.core_type<tc>, window_params = [{transform_indices = @transform_0, window_bounds = array<i64: 8, 32>}, {pipeline_mode = #tpu.pipeline_mode<synchronous>, transform_indices = @transform_1, window_bounds = array<i64: 32, 32>}, {pipeline_mode = #tpu.pipeline_mode<synchronous>, transform_indices = @transform_2, window_bounds = array<i64: 1, 32>}, {pipeline_mode = #tpu.pipeline_mode<synchronous>, transform_indices = @transform_3, window_bounds = array<i64: 1, 32>}, {pipeline_mode = #tpu.pipeline_mode<synchronous>, transform_indices = @transform_4, window_bounds = array<i64: 1, 32>}, {transform_indices = @transform_5, window_bounds = array<i64: 32, 128>}, {transform_indices = @transform_6, window_bounds = array<i64: 1, 128>}, {transform_indices = @transform_7, window_bounds = array<i64: 8, 128>}]} {
    %c0_i32 = arith.constant 0 : i32
    %0 = arith.cmpi eq, %arg1, %c0_i32 : i32
    %c0_i32_0 = arith.constant 0 : i32
    %1 = arith.cmpi eq, %arg2, %c0_i32_0 : i32
    %2 = arith.andi %0, %1 : i1
    %3 = arith.extui %2 : i1 to i32
    %c0_i32_1 = arith.constant 0 : i32
    %4 = arith.cmpi ne, %3, %c0_i32_1 : i32
    scf.if %4 {
      %c0_10 = arith.constant 0 : index
      %c0_11 = arith.constant 0 : index
      %17 = vector.load %arg3[%c0_10, %c0_11] : memref<8x32xf32, #tpu.memory_space<vmem>>, vector<8x32xf32>
      %c0_12 = arith.constant 0 : index
      %c0_13 = arith.constant 0 : index
      %18 = vector.load %arg4[%c0_12, %c0_13] : memref<32x32xf32, #tpu.memory_space<vmem>>, vector<32x32xf32>
      %cst_14 = arith.constant dense<0.000000e+00> : vector<8x32xf32>
      %19 = tpu.matmul %17, %18, %cst_14 {dimension_numbers = #tpu.dot_dimension_numbers<[1], [0], [0], [1], [0, 0, 1, 1], [], []>} : vector<8x32xf32>, vector<32x32xf32>, vector<8x32xf32> -> vector<8x32xf32>
      %c0_15 = arith.constant 0 : index
      %c0_16 = arith.constant 0 : index
      %20 = vector.load %arg5[%c0_15, %c0_16] : memref<1x32xf32, #tpu.memory_space<vmem>>, vector<1x32xf32>
      %21 = vector.broadcast %20 : vector<1x32xf32> to vector<8x32xf32>
      %22 = arith.addf %19, %21 : vector<8x32xf32>
      %cst_17 = arith.constant 5.000000e-01 : f32
      %23 = vector.broadcast %cst_17 : f32 to vector<8x32xf32>
      %24 = arith.mulf %23, %22 : vector<8x32xf32>
      %cst_18 = arith.constant 0.707106769 : f32
      %25 = vector.broadcast %cst_18 : f32 to vector<8x32xf32>
      %26 = arith.mulf %22, %25 : vector<8x32xf32>
      %27 = math.erf %26 : vector<8x32xf32>
      %cst_19 = arith.constant 1.000000e+00 : f32
      %28 = vector.broadcast %cst_19 : f32 to vector<8x32xf32>
      %29 = arith.addf %28, %27 : vector<8x32xf32>
      %30 = arith.mulf %24, %29 : vector<8x32xf32>
      %cst_20 = arith.constant dense<0.000000e+00> : vector<8xf32>
      %31 = vector.multi_reduction <add>, %30, %cst_20 [1] : vector<8x32xf32> to vector<8xf32>
      %32 = vector.shape_cast %31 : vector<8xf32> to vector<8x1xf32>
      %cst_21 = arith.constant 3.125000e-02 : f32
      %33 = vector.broadcast %cst_21 : f32 to vector<8x1xf32>
      %34 = arith.mulf %32, %33 : vector<8x1xf32>
      %35 = arith.mulf %30, %30 : vector<8x32xf32>
      %cst_22 = arith.constant dense<0.000000e+00> : vector<8xf32>
      %36 = vector.multi_reduction <add>, %35, %cst_22 [1] : vector<8x32xf32> to vector<8xf32>
      %37 = vector.shape_cast %36 : vector<8xf32> to vector<8x1xf32>
      %cst_23 = arith.constant 3.125000e-02 : f32
      %38 = vector.broadcast %cst_23 : f32 to vector<8x1xf32>
      %39 = arith.mulf %37, %38 : vector<8x1xf32>
      %40 = arith.mulf %34, %34 : vector<8x1xf32>
      %41 = arith.subf %39, %40 : vector<8x1xf32>
      %cst_24 = arith.constant 0.000000e+00 : f32
      %42 = vector.broadcast %cst_24 : f32 to vector<8x1xf32>
      %43 = arith.maximumf %41, %42 : vector<8x1xf32>
      %44 = vector.broadcast %34 : vector<8x1xf32> to vector<8x32xf32>
      %45 = arith.subf %30, %44 : vector<8x32xf32>
      %cst_25 = arith.constant 9.99999996E-13 : f32
      %46 = vector.broadcast %cst_25 : f32 to vector<8x1xf32>
      %47 = arith.addf %43, %46 : vector<8x1xf32>
      %48 = math.rsqrt %47 : vector<8x1xf32>
      %49 = vector.broadcast %48 : vector<8x1xf32> to vector<8x32xf32>
      %50 = arith.mulf %45, %49 : vector<8x32xf32>
      %c0_26 = arith.constant 0 : index
      %c0_27 = arith.constant 0 : index
      %51 = vector.load %arg6[%c0_26, %c0_27] : memref<1x32xf32, #tpu.memory_space<vmem>>, vector<1x32xf32>
      %52 = vector.broadcast %51 : vector<1x32xf32> to vector<8x32xf32>
      %53 = arith.mulf %50, %52 : vector<8x32xf32>
      %c0_28 = arith.constant 0 : index
      %c0_29 = arith.constant 0 : index
      %54 = vector.load %arg7[%c0_28, %c0_29] : memref<1x32xf32, #tpu.memory_space<vmem>>, vector<1x32xf32>
      %55 = vector.broadcast %54 : vector<1x32xf32> to vector<8x32xf32>
      %56 = arith.addf %53, %55 : vector<8x32xf32>
      %c0_30 = arith.constant 0 : index
      %c0_31 = arith.constant 0 : index
      %57 = vector.load %arg11[%c0_30, %c0_31] : memref<8x32xf32, #tpu.memory_space<vmem>>, vector<8x32xf32>
      tpu.vector_store %arg11[%c0_30, %c0_31], %56 {strides = array<i32>} : memref<8x32xf32, #tpu.memory_space<vmem>>, vector<8x32xf32>,
      %cst_32 = arith.constant 0xFF800000 : f32
      %58 = vector.broadcast %cst_32 : f32 to vector<8x1xf32>
      %c0_33 = arith.constant 0 : index
      %c0_34 = arith.constant 0 : index
      %59 = vector.load %arg12[%c0_33, %c0_34] : memref<8x1xf32, #tpu.memory_space<vmem>>, vector<8x1xf32>
      tpu.vector_store %arg12[%c0_33, %c0_34], %58 {strides = array<i32>} : memref<8x1xf32, #tpu.memory_space<vmem>>, vector<8x1xf32>,
      %cst_35 = arith.constant 0.000000e+00 : f32
      %60 = vector.broadcast %cst_35 : f32 to vector<8x1xf32>
      %c0_36 = arith.constant 0 : index
      %c0_37 = arith.constant 0 : index
      %61 = vector.load %arg13[%c0_36, %c0_37] : memref<8x1xf32, #tpu.memory_space<vmem>>, vector<8x1xf32>
      tpu.vector_store %arg13[%c0_36, %c0_37], %60 {strides = array<i32>} : memref<8x1xf32, #tpu.memory_space<vmem>>, vector<8x1xf32>,
    } else {
    }
    %c0 = arith.constant 0 : index
    %c0_2 = arith.constant 0 : index
    %5 = vector.load %arg11[%c0, %c0_2] : memref<8x32xf32, #tpu.memory_space<vmem>>, vector<8x32xf32>
    %c0_3 = arith.constant 0 : index
    %c0_4 = arith.constant 0 : index
    %6 = vector.load %arg8[%c0_3, %c0_4] : memref<32x128xf32, #tpu.memory_space<vmem>>, vector<32x128xf32>
    %cst = arith.constant dense<0.000000e+00> : vector<8x128xf32>
    %7 = tpu.matmul %5, %6, %cst {dimension_numbers = #tpu.dot_dimension_numbers<[1], [0], [0], [1], [0, 0, 1, 1], [], []>} : vector<8x32xf32>, vector<32x128xf32>, vector<8x128xf32> -> vector<8x128xf32>
    %c0_5 = arith.constant 0 : index
    %c0_6 = arith.constant 0 : index
    %8 = vector.load %arg9[%c0_5, %c0_6] : memref<1x128xf32, #tpu.memory_space<vmem>>, vector<1x128xf32>
    %9 = vector.broadcast %8 : vector<1x128xf32> to vector<8x128xf32>
    %10 = arith.addf %7, %9 : vector<8x128xf32>
    %c0_i32_7 = arith.constant 0 : i32
    %11 = arith.cmpi eq, %arg1, %c0_i32_7 : i32
    %12 = arith.extui %11 : i1 to i32
    %c0_i32_8 = arith.constant 0 : i32
    %13 = arith.cmpi ne, %12, %c0_i32_8 : i32
    scf.if %13 {
      %c0_10 = arith.constant 0 : index
      %c0_11 = arith.constant 0 : index
      %17 = vector.load %arg12[%c0_10, %c0_11] : memref<8x1xf32, #tpu.memory_space<vmem>>, vector<8x1xf32>
      %cst_12 = arith.constant dense<0xFF800000> : vector<8xf32>
      %18 = vector.multi_reduction <maximumf>, %10, %cst_12 [1] : vector<8x128xf32> to vector<8xf32>
      %19 = vector.shape_cast %18 : vector<8xf32> to vector<8x1xf32>
      %20 = arith.maximumf %17, %19 : vector<8x1xf32>
      %c0_13 = arith.constant 0 : index
      %c0_14 = arith.constant 0 : index
      %21 = vector.load %arg13[%c0_13, %c0_14] : memref<8x1xf32, #tpu.memory_space<vmem>>, vector<8x1xf32>
      %22 = arith.subf %17, %20 : vector<8x1xf32>
      %23 = math.exp %22 : vector<8x1xf32>
      %24 = arith.mulf %21, %23 : vector<8x1xf32>
      %25 = vector.broadcast %20 : vector<8x1xf32> to vector<8x128xf32>
      %26 = arith.subf %10, %25 : vector<8x128xf32>
      %27 = math.exp %26 : vector<8x128xf32>
      %cst_15 = arith.constant dense<0.000000e+00> : vector<8xf32>
      %28 = vector.multi_reduction <add>, %27, %cst_15 [1] : vector<8x128xf32> to vector<8xf32>
      %29 = vector.shape_cast %28 : vector<8xf32> to vector<8x1xf32>
      %30 = arith.addf %24, %29 : vector<8x1xf32>
      %c0_16 = arith.constant 0 : index
      %c0_17 = arith.constant 0 : index
      %31 = vector.load %arg13[%c0_16, %c0_17] : memref<8x1xf32, #tpu.memory_space<vmem>>, vector<8x1xf32>
      tpu.vector_store %arg13[%c0_16, %c0_17], %30 {strides = array<i32>} : memref<8x1xf32, #tpu.memory_space<vmem>>, vector<8x1xf32>,
      %c0_18 = arith.constant 0 : index
      %c0_19 = arith.constant 0 : index
      %32 = vector.load %arg12[%c0_18, %c0_19] : memref<8x1xf32, #tpu.memory_space<vmem>>, vector<8x1xf32>
      tpu.vector_store %arg12[%c0_18, %c0_19], %20 {strides = array<i32>} : memref<8x1xf32, #tpu.memory_space<vmem>>, vector<8x1xf32>,
      %c3_i32 = arith.constant 3 : i32
      %33 = arith.cmpi eq, %arg2, %c3_i32 : i32
      %34 = arith.extui %33 : i1 to i32
      %c0_i32_20 = arith.constant 0 : i32
      %35 = arith.cmpi ne, %34, %c0_i32_20 : i32
      scf.if %35 {
        %c0_21 = arith.constant 0 : index
        %c0_22 = arith.constant 0 : index
        %36 = vector.load %arg12[%c0_21, %c0_22] : memref<8x1xf32, #tpu.memory_space<vmem>>, vector<8x1xf32>
        %c0_23 = arith.constant 0 : index
        %c0_24 = arith.constant 0 : index
        %37 = vector.load %arg13[%c0_23, %c0_24] : memref<8x1xf32, #tpu.memory_space<vmem>>, vector<8x1xf32>
        %38 = math.log %37 : vector<8x1xf32>
        %39 = arith.addf %36, %38 : vector<8x1xf32>
        %c0_25 = arith.constant 0 : index
        %c0_26 = arith.constant 0 : index
        %40 = vector.load %arg12[%c0_25, %c0_26] : memref<8x1xf32, #tpu.memory_space<vmem>>, vector<8x1xf32>
        tpu.vector_store %arg12[%c0_25, %c0_26], %39 {strides = array<i32>} : memref<8x1xf32, #tpu.memory_space<vmem>>, vector<8x1xf32>,
      } else {
      }
    } else {
    }
    %c1_i32 = arith.constant 1 : i32
    %14 = arith.cmpi eq, %arg1, %c1_i32 : i32
    %15 = arith.extui %14 : i1 to i32
    %c0_i32_9 = arith.constant 0 : i32
    %16 = arith.cmpi ne, %15, %c0_i32_9 : i32
    scf.if %16 {
      %c0_10 = arith.constant 0 : index
      %c0_11 = arith.constant 0 : index
      %17 = vector.load %arg12[%c0_10, %c0_11] : memref<8x1xf32, #tpu.memory_space<vmem>>, vector<8x1xf32>
      %18 = vector.broadcast %17 : vector<8x1xf32> to vector<8x128xf32>
      %19 = arith.subf %10, %18 : vector<8x128xf32>
      %c0_12 = arith.constant 0 : index
      %c0_13 = arith.constant 0 : index
      %20 = vector.load %arg10[%c0_12, %c0_13] : memref<8x128xf32, #tpu.memory_space<vmem>>, vector<8x128xf32>
      tpu.vector_store %arg10[%c0_12, %c0_13], %19 {strides = array<i32>} : memref<8x128xf32, #tpu.memory_space<vmem>>, vector<8x128xf32>,
    } else {
    }
    return
  }
  func.func @transform_0(%arg0: i32, %arg1: i32, %arg2: i32) -> (i32, i32) {
    %c0_i32 = arith.constant 0 : i32
    %c0_i32_0 = arith.constant 0 : i32
    return %arg0, %c0_i32 : i32, i32
  }
  func.func @transform_1(%arg0: i32, %arg1: i32, %arg2: i32) -> (i32, i32) {
    %c0_i32 = arith.constant 0 : i32
    %c0_i32_0 = arith.constant 0 : i32
    %c0_i32_1 = arith.constant 0 : i32
    return %c0_i32, %c0_i32_0 : i32, i32
  }
  func.func @transform_2(%arg0: i32, %arg1: i32, %arg2: i32) -> (i32, i32) {
    %c0_i32 = arith.constant 0 : i32
    %c0_i32_0 = arith.constant 0 : i32
    %c0_i32_1 = arith.constant 0 : i32
    return %c0_i32, %c0_i32_0 : i32, i32
  }
  func.func @transform_3(%arg0: i32, %arg1: i32, %arg2: i32) -> (i32, i32) {
    %c0_i32 = arith.constant 0 : i32
    %c0_i32_0 = arith.constant 0 : i32
    %c0_i32_1 = arith.constant 0 : i32
    return %c0_i32, %c0_i32_0 : i32, i32
  }
  func.func @transform_4(%arg0: i32, %arg1: i32, %arg2: i32) -> (i32, i32) {
    %c0_i32 = arith.constant 0 : i32
    %c0_i32_0 = arith.constant 0 : i32
    %c0_i32_1 = arith.constant 0 : i32
    return %c0_i32, %c0_i32_0 : i32, i32
  }
  func.func @transform_5(%arg0: i32, %arg1: i32, %arg2: i32) -> (i32, i32) {
    %c0_i32 = arith.constant 0 : i32
    %c0_i32_0 = arith.constant 0 : i32
    return %c0_i32, %arg2 : i32, i32
  }
  func.func @transform_6(%arg0: i32, %arg1: i32, %arg2: i32) -> (i32, i32) {
    %c0_i32 = arith.constant 0 : i32
    %c0_i32_0 = arith.constant 0 : i32
    return %c0_i32, %arg2 : i32, i32
  }
  func.func @transform_7(%arg0: i32, %arg1: i32, %arg2: i32) -> (i32, i32) {
    %0 = arith.muli %arg1, %arg2 : i32
    %c0_i32 = arith.constant 0 : i32
    return %arg0, %0 : i32, i32
  }
}

</mosaic_0001>

<bundles_post_ra>
// kernel: tpu_custom_call.1
= control target key start
LH: loop header
LB: loop body
LE: loop exit
PB: predicated region body
PF: predicated region fallthrough
CT: control target
= control target key end

     0   :  { %s1810_s0 = inlined_call_operand.hbm [shape: f32[16,32], index: 0, kind: input, shape index: {}]   ;;  %s1811_s1 = inlined_call_operand.hbm [shape: f32[32,32], index: 1, kind: input, shape index: {}]   ;;  %s1812_s2 = inlined_call_operand.vmem [shape: f32[1,32], index: 2, kind: input, shape index: {}]   ;;  %s1813_s3 = inlined_call_operand.vmem [shape: f32[1,32], index: 3, kind: input, shape index: {}]   ;;  %s1814_s4 = inlined_call_operand.vmem [shape: f32[1,32], index: 4, kind: input, shape index: {}]   ;;  %s1815_s5 = inlined_call_operand.hbm [shape: f32[32,512], index: 5, kind: input, shape index: {}]   ;;  %s1816_s6 = inlined_call_operand.vmem [shape: f32[1,512], index: 6, kind: input, shape index: {}]   ;;  %s1817_s7 = inlined_call_operand.hbm [shape: f32[16,512], index: 7, kind: output, shape index: {}]  }
   0x1   :  { %1837 = sst [smem:[#allocation31_spill]] %s1810_s0 }
   0x2   :  { %1838 = sst [smem:[#allocation32_spill]] %s1811_s1 }
   0x3   :  { %1839 = sst [smem:[#allocation33_spill]] %s1812_s2 }
   0x4   :  { %1840 = sst [smem:[#allocation34_spill]] %s1813_s3 }
   0x5   :  { %1841 = sst [smem:[#allocation35_spill]] %s1814_s4 }
   0x6   :  { %1842 = sst [smem:[#allocation36_spill]] %s1815_s5 }
   0x7   :  { %1843 = sst [smem:[#allocation37_spill]] %s1816_s6 }
   0x8   :  { %1844 = sst [smem:[#allocation38_spill]] %s1817_s7 }
   0x9   :  { %12 = vsyncpa [#allocation6], 0 }
   0xa   :  { %14 = vsyncpa [#allocation6 + $0x1], 0 }
   0xb   :  { %15 = vsyncpa [#allocation9], 0 }
   0xc   :  { %16 = vsyncpa [#allocation7], 0 }
   0xd   :  { %18 = vsyncpa [#allocation7 + $0x1], 0  ;;  %s1365_s24 = smov 0   ;;  %s1367_s25 = smov 0  }
   0xe   :  { %s1369_s26 = smov 0   ;;  %s1371_s27 = smov 0  }
   0xf   :  { %s1373_s28 = smov 0   ;;  %s1375_s29 = smov 0  }
  0x10   :  { %s1377_s30 = smov 0   ;;  %s1379_s8 = smov 0  }
  0x11   :  { %s1381_s9 = smov 0   ;;  %s1383_s10 = smov 0  }
  0x12   :  { %s1385_s11 = smov 0   ;;  %s1387_s12 = smov 0  }
  0x13   :  { %s1389_s13 = smov 0   ;;  %s1391_s14 = smov 0  }
  0x14   :  { %s1393_s15 = smov 0   ;;  %s1395_s16 = smov 0  }
  0x15 LB: > { %1845 = sst [smem:[#allocation16_spill]] %s1255_s26  ;;  %s36_s17 = sadd.s32 1, %s1295_s13  ;;  %s1307_s16 = sphi %s1395_s16, %s24_s16   ;;  %s1303_s15 = sphi %s1393_s15, %s1924_s15   ;;  %s1299_s14 = sphi %s1391_s14, %s1923_s14   ;;  %s1295_s13 = sphi %s1389_s13, %s1922_s13   ;;  %s1291_s12 = sphi %s1387_s12, %s1921_s12   ;;  %s1287_s11 = sphi %s1385_s11, %s1920_s11   ;;  %s1283_s10 = sphi %s1383_s10, %s1919_s10   ;;  %s1279_s9 = sphi %s1381_s9, %s1906_s9   ;;  %s1275_s8 = sphi %s1379_s8, %s1918_s8   ;;  %s1271_s30 = sphi %s1377_s30, %s1917_s30   ;;  %s1267_s29 = sphi %s1375_s29, %s1904_s29   ;;  %s1263_s28 = sphi %s1373_s28, %s1916_s28   ;;  %s1259_s27 = sphi %s1371_s27, %s1915_s27   ;;  %s1255_s26 = sphi %s1369_s26, %s1902_s26   ;;  %s1251_s25 = sphi %s1367_s25, %s1914_s25   ;;  %s1247_s24 = sphi %s1365_s24, %s1912_s24  }
  0x16   : > { %1846 = sst [smem:[#allocation17_spill]] %s1259_s27  ;;  %s39_s18 = sadd.s32 1, %s1299_s14 }
  0x17   : > { %1847 = sst [smem:[#allocation18_spill]] %s1267_s29  ;;  %p37_p0 = scmp.ge.s32.totalorder %s36_s17, 4 }
  0x18   : > { %1848 = sst [smem:[#allocation19_spill]] %s1279_s9  ;;  %s43_s19 = sadd.s32 1, %s1303_s15 }
  0x19   : > { %1849 = sst [smem:[#allocation20_spill]] %s1283_s10  ;;  %s50_s20 = sadd.s32 1, %s1279_s9 }
  0x1a   : > { %1850 = sst [smem:[#allocation21_spill]] %s1287_s11  ;;  %p57_p1 = scmp.ne.s32.totalorder %s1279_s9, %s1275_s8 }
  0x1b   : > { %1851 = sst [smem:[#allocation22_spill]] %s1291_s12  ;;  %s1926_s17 = smov (%p37_p0, %s36_s17), 0 }
  0x1c   : > { %1852 = sst [smem:[#allocation23_spill]] %s1299_s14  ;;  %s1928_s18 = smov (!%p37_p0, %s39_s18), %s1299_s14 }
  0x1d   : > { %1853 = sst [smem:[#allocation24_spill]] %s1303_s15  ;;  %p58_p2 = scmp.eq.s32.totalorder %s1307_s16, 0 }
  0x1e   : > { %1854 = sst [smem:[#allocation25_spill]] %s1926_s17  ;;  %p41_p4 = scmp.ge.s32.totalorder %s1928_s18, 2 }
  0x1f   : > { %s157_s21 = ssub.s32 %s1295_s13, %s1926_s17  ;;  %p1461_p5 = por %p58_p2, %p57_p1 }
  0x20   : > { %p158_p6 = scmp.eq.s32.totalorder %s157_s21, 0  ;;  %s1930_s18 = smov (%p41_p4, %s1928_s18), 0 }
  0x21   : > { %1856 = sst [smem:[#allocation26_spill]] %s1930_s18  ;;  %s1932_s19 = smov (!%p41_p4, %s43_s19), %s1303_s15 }
  0x22   : > { %s160_s23 = sadd.s32 1, %s1267_s29  ;;  %p167_p7 = scmp.ne.s32.totalorder %s1267_s29, %s1263_s28 }
  0x23   : > { %p45_p8 = scmp.ge.s32.totalorder %s1932_s19, 2  ;;  %s209_s12 = smul.u32 %s1295_s13, %s1299_s14 }
  0x24   : > { %s1474_s7 = scalar_select %p158_p6, %s1267_s29, %s160_s23  }
  0x25   : > { %s1934_s19 = smov (%p45_p8, %s1932_s19), 0  ;;  %p1480_p10 = por %p167_p7, %p58_p2 }
  0x26   : > { %1857 = sst [smem:[#allocation27_spill]] %s1474_s7  ;;  %s47_s4 = ssub.s32 %s1303_s15, %s1934_s19 }
  0x27   : > { %1858 = sst [smem:[#allocation28_spill]] %s1934_s19  ;;  %s210_s3 = smul.u32 %s1930_s18, %s1926_s17 }
  0x28   : > { %p48_p11 = scmp.eq.s32.totalorder %s47_s4, 0  ;;  %s216_s2 = sadd.s32 1, %s1255_s26 }
  0x29   : > { %s212_s6 = ssub.s32 %s209_s12, %s210_s3  ;;  %p893_p12 = scmp.lt.s32.totalorder %s1307_s16, 16 }
  0x2a   : > { %s1492_s11 = scalar_select %p48_p11, %s1279_s9, %s50_s20  }
  0x2b   : > { %s213_s23 = sor.u32 %s212_s6, %s47_s4  ;;  %s275_s7 = sand.u32 1, %s1307_s16  }
  0x2c   : > { %1860 = sst [smem:[#allocation29_spill]] %s1492_s11  ;;  %p214_p13 = scmp.eq.s32.totalorder %s213_s23, 0 }
  0x2d   : > { %s277_s10 = sand.u32 1, %s1279_s9   ;;  %s801_s29 = sshll.u32 %s1303_s15, 7 }
  0x2e   : > { %s1498_s1 = scalar_select %p214_p13, %s1255_s26, %s216_s2  }
  0x2f   : > { %s800_s5 = sshll.u32 %s277_s10, 3  ;;  %s1862_s0 = sld [smem:[#allocation31_spill]] }
  0x30   : > { %1861 = sst [smem:[#allocation30_spill]] %s1498_s1  ;;  %s279_s3 = scalar_lea.vmem [#allocation5], %s800_s5 }
  0x31   : > { %s286_s12 = sshll.u32 %s279_s3, 4  ;;  %p1508_p0 = pnand %p893_p12, %p1461_p5  ;;  %s1512_s12 = int_to_ptr.vmem [resolvable:$true] %s286_s12 }
  0x32   : > { %p1516_p1 = pnand %p893_p12, %p1480_p10  ;;  %s1520_s6 = scalar_lea.sflag [#allocation6], %s275_s7 }
  0x33   : > { %p1051_p4 = pneg %p1508_p0 }
  0x34   : > { %s1864_s2 = scalar_select %p1516_p1, 1, 0 }
  0x35   : > { %s1504_s19 = scalar_lea.hbm %s1862_s0, %s801_s29  ;;  %s1054_s10 = scalar_lea.hbm %s1862_s0, 256 }
  0x36   : > { %s1049_s27 = scalar_lea.hbm %s1504_s19, 128  ;;  %p1055_p7 = scmp.lt.u32.totalorder %s1504_s19, %s1862_s0 }
  0x37   : > { %p1050_p2 = scmp.ne.s32.totalorder %s1504_s19, %s1049_s27  ;;  %p1056_p8 = scmp.lt.u32.totalorder %s1054_s10, %s1049_s27 }
  0x38   : > { %p1058_p11 = scmp.lt.u32.totalorder %s1049_s27, %s1504_s19 }
  0x39   : > { %p1052_p5 = pnand %p1051_p4, %p1050_p2  ;;  %p1057_p10 = por %p1056_p8, %p1055_p7 }
  0x3b   : > { %p1053_p6 = pneg %p1052_p5  ;;  %p1059_p12 = por %p1058_p11, %p1057_p10 }
  0x3d   : > { %p1060_p13 = pnand %p1059_p12, %p1053_p6 }
  0x3f   : > { %1063 = shalt.err (!%p1060_p13)
}
  0x40   : > { %s1064_s7 = scalar_lea.vmem %s1512_s12, 128  ;;  %s1309_s22 = smov [#allocation5]  }
  0x41   : > { %p1065_p2 = scmp.ne.s32.totalorder %s1512_s12, %s1064_s7  ;;  %s1069_s21 = sshll.u32 %s1309_s22, 4  ;;  %s1070_s21 = int_to_ptr.vmem [resolvable:$false] %s1069_s21 }
  0x42   : > { %s1071_s23 = scalar_lea.vmem %s1070_s21, 256  ;;  %p1072_p3 = scmp.lt.s32.totalorder %s1512_s12, %s1070_s21 }
  0x43   : > { %p1067_p5 = pnand %p1065_p2, %p1051_p4  ;;  %p1073_p7 = scmp.lt.s32.totalorder %s1071_s23, %s1064_s7 }
  0x45   : > { %p1068_p9 = pneg %p1067_p5  ;;  %p1074_p8 = por %p1073_p7, %p1072_p3 }
  0x47   : > { %p1075_p10 = pnand %p1074_p8, %p1068_p9 }
  0x49   : > { %1078 = shalt.err (!%p1075_p10)
}
  0x4a   : > { %s1865_s3 = sld [smem:[#allocation17_spill]]  ;;  %s1549_s27 = sadd.s32 4294967295, %s1307_s16  }
  0x4b   : > { %884 = dma.hbm_to_vmem [thread:$0]  (!%p1508_p0), %s1504_s19, 128, %s1512_s12, %s1520_s6  }
  0x4c   : > { %s796_s4 = sadd.s32 4294967294, %s1307_s16   ;;  %p1831_p3 = scmp.eq.s32.totalorder %s1549_s27, 0 }
  0x4d   : > { %s1866_s5 = sld [smem:[#allocation18_spill]]  ;;  %p226_p9 = scmp.ne.s32.totalorder %s1255_s26, %s1251_s25 }
  0x4e   : > { %p227_p4 = scmp.eq.s32.totalorder %s1549_s27, 15  ;;  %p232_p6 = scmp.ne.s32.totalorder %s1251_s25, %s1247_s24 }
  0x4f   : > { %p1867_p11 = scmp.ne.s32.totalorder %s1275_s8, %s1271_s30  ;;  %p233_p5 = scmp.eq.s32.totalorder %s796_s4, 15 }
  0x50   : > { %p1869_p0 = scmp.ne.s32.totalorder %s1263_s28, %s1865_s3  ;;  %p1576_p2 = por %p227_p4, %p226_p9 }
  0x51   : > { %p1563_p12 = por %p1831_p3, %p1867_p11  ;;  %p797_p7 = scmp.ge.s32.totalorder %s1307_s16, 1 }
  0x52   : > { %p1572_p13 = por %p1869_p0, %p1831_p3  ;;  %p240_p8 = scmp.lt.s32.totalorder %s1307_s16, 17 }
  0x53   : > { %s1868_s29 = scalar_select %p1563_p12, 1, 0 }
  0x54   : > { %s1870_s19 = scalar_select %p1572_p13, 1, 0 }
  0x55   : > { %s1871_s12 = scalar_select %p1576_p2, 1, 0 }
  0x56   : > { %p1582_p10 = por %p233_p5, %p232_p6  ;;  %p1586_p11 = pnand %p797_p7, %p240_p8 }
  0x57   : > { %s1310_s14 = smov [#allocation8]   ;;  %s295_s7 = sand.u32 1, %s1866_s5  }
  0x58   : > { %s1872_s30 = scalar_select %p1582_p10, 1, 0 }
  0x59   : > { %s1873_s10 = scalar_select %p1586_p11, 1, 0 }
  0x5a   : > { %s252_s20 = sshll.u32 %s1310_s14, 4  ;;  %p877_p0 = pneg %p1586_p11  ;;  %s253_s20 = int_to_ptr.vmem [resolvable:$true] %s252_s20 }
  0x5b   : > { %s802_s21 = sshll.u32 %s295_s7, 5  ;;  %s803_s23 = sshll.u32 %s1295_s13, 7 }
  0x5c   : > { %p1595_p9 = pnand %p877_p0, %p1831_p3  ;;  %s1875_s0 = sld [smem:[#allocation36_spill]] }
  0x5d   : > { %s1876_s14 = sld [smem:[#allocation32_spill]] }
  0x5e   : > { %p1081_p6 = pneg %p1595_p9 }
  0x62   : > { %s1603_s18 = scalar_lea.hbm %s1875_s0, %s803_s23 }
  0x63   : > { %s1877_s1 = smov %s1876_s14  ;;  %s1079_s11 = scalar_lea.hbm %s1876_s14, 512 }
  0x64   : > { %p1080_p4 = scmp.ne.s32.totalorder %s1877_s1, %s1079_s11  ;;  %p1086_p8 = scmp.lt.u32.totalorder %s1079_s11, %s1877_s1 }
  0x66   : > { %p1082_p5 = pnand %p1081_p6, %p1080_p4 }
  0x68   : > { %p1083_p7 = pneg %p1082_p5 }
  0x6a   : > { %p1088_p0 = pnand %p1086_p8, %p1083_p7 }
  0x6c   : > { %1091 = shalt.err (!%p1088_p0)
}
  0x6d   : > { %s1092_s23 = scalar_lea.vmem %s253_s20, 512  ;;  %p1100_p13 = scmp.lt.s32.totalorder %s253_s20, %s253_s20 }
  0x6e   : > { %p1093_p3 = scmp.ne.s32.totalorder %s253_s20, %s1092_s23  ;;  %p1101_p12 = scmp.lt.s32.totalorder %s1092_s23, %s1092_s23 }
  0x70   : > { %p1095_p10 = pnand %p1093_p3, %p1081_p6  ;;  %p1102_p11 = por %p1101_p12, %p1100_p13 }
  0x72   : > { %p1096_p2 = pneg %p1095_p10 }
  0x74   : > { %p1103_p1 = pnand %p1102_p11, %p1096_p2 }
  0x76   : > { %1106 = shalt.err (!%p1103_p1)
}
  0x77   : > { %s1311_s26 = smov 128   ;;  %s1312_s9 = smov 8  }
  0x78   : > { %880 = dma.hbm_to_vmem [thread:$0]  (!%p1595_p9), %s1877_s1, 512, %s253_s20, [#allocation9], %s1311_s26, %s1311_s26, %s1312_s9  }
  0x79   : > { %s297_s17 = scalar_lea.vmem [#allocation10], %s802_s21  ;;  %s1107_s4 = scalar_lea.hbm %s1603_s18, 512 }
  0x7a   : > { %s303_s3 = sshll.u32 %s297_s17, 4  ;;  %p1108_p1 = scmp.ne.s32.totalorder %s1603_s18, %s1107_s4  ;;  %s1624_s3 = int_to_ptr.vmem [resolvable:$true] %s303_s3 }
  0x7b   : > { %p1878_p3 = scmp.ne.s32.totalorder %s1864_s2, 0  ;;  %s1112_s5 = scalar_lea.hbm %s1875_s0, 2048 }
  0x7c   : > { %p1113_p10 = scmp.lt.u32.totalorder %s1603_s18, %s1875_s0  ;;  %p1114_p11 = scmp.lt.u32.totalorder %s1112_s5, %s1107_s4 }
  0x7d   : > { %p1109_p12 = pneg %p1878_p3  ;;  %p1116_p4 = scmp.lt.u32.totalorder %s1107_s4, %s1603_s18 }
  0x7e   : > { %p1115_p9 = por %p1114_p11, %p1113_p10 }
  0x7f   : > { %p1110_p13 = pnand %p1109_p12, %p1108_p1 }
  0x80   : > { %p1117_p6 = por %p1116_p4, %p1115_p9 }
  0x81   : > { %p1111_p2 = pneg %p1110_p13 }
  0x83   : > { %p1118_p5 = pnand %p1117_p6, %p1111_p2 }
  0x85   : > { %1121 = shalt.err (!%p1118_p5)
}
  0x86   : > { %s1122_s20 = scalar_lea.vmem %s1624_s3, 512  ;;  %s1313_s21 = smov [#allocation10]  }
  0x87   : > { %p1123_p7 = scmp.ne.s32.totalorder %s1624_s3, %s1122_s20  ;;  %s1127_s11 = sshll.u32 %s1313_s21, 4  ;;  %s1128_s11 = int_to_ptr.vmem [resolvable:$false] %s1127_s11 }
  0x88   : > { %s1129_s15 = scalar_lea.vmem %s1128_s11, 1024  ;;  %p1130_p1 = scmp.lt.s32.totalorder %s1624_s3, %s1128_s11 }
  0x89   : > { %p1125_p8 = pnand %p1123_p7, %p1109_p12  ;;  %p1131_p13 = scmp.lt.s32.totalorder %s1129_s15, %s1122_s20 }
  0x8b   : > { %p1126_p0 = pneg %p1125_p8  ;;  %p1132_p10 = por %p1131_p13, %p1130_p1 }
  0x8d   : > { %p1133_p11 = pnand %p1132_p10, %p1126_p0 }
  0x8f   : > { %1136 = shalt.err (!%p1133_p11)
}
  0x90   : > { %s1314_s17 = smov 512   ;;  %p1879_p12 = scmp.ne.s32.totalorder %s1873_s10, 0 }
  0x91   : > { %887 = dma.hbm_to_vmem [thread:$0]  (!%p1878_p3), %s1603_s18, 512, %s1624_s3, %s1520_s6, %s1314_s17, %s1311_s26, %s1312_s9  }
  0x92   : > { %321 = sbr.rel (%p1879_p12) target bundleno = 1433 (0x599), region = 48  ;;  %s323_s4 = sand.u32 (!%p1879_p12), 1, %s1549_s27  }
  0x93   : > { %s325_s22 = sand.u32 (!%p1879_p12), 1, %s1275_s8   ;;  %s324_s5 = scalar_lea.sflag (!%p1879_p12), [#allocation6], %s323_s4 }
  0x94   : > { %s1658_s14 = sshll.u32 (!%p1879_p12), %s325_s22, 3  ;;  %p1880_p2 = scmp.ne.s32.totalorder (!%p1879_p12), %s1868_s29, 0 }
  0x95   : > { %s327_s7 = scalar_lea.vmem (!%p1879_p12), [#allocation5], %s1658_s14 }
  0x99   : > { %1230 = dma.done.wait (%p1880_p2), %s324_s5, 128  }
  0x9a   : > { %1232 = vsyncadd (%p1880_p2), %s324_s5, 4294967168  ;;  %p1881_p3 = scmp.eq.s32.totalorder %s1549_s27, 0 }
  0x9c   : > { %1234 = dma.done.wait (%p1881_p3), [#allocation9], 512   ;;  %p1882_p9 = pmov %p1881_p3 }
  0x9d   : > { %s338_s18 = sand.u32 1, %s1263_s28   ;;  %p1883_p4 = scmp.ne.s32.totalorder %s1870_s19, 0 }
  0x9e   : > { %1236 = vsyncadd (%p1882_p9), [#allocation9], 4294966784  ;;  %s807_s2 = sshll.u32 %s338_s18, 5 }
  0x9f   : > { %s1670_s6 = scalar_lea.vmem [#allocation10], %s807_s2 }
  0xa0   : > { %1238 = dma.done.wait (%p1883_p4), %s324_s5, 512  }
  0xa1   : > { %1240 = vsyncadd (%p1883_p4), %s324_s5, 4294966784  ;;  %s1884_s29 = sld [smem:[#allocation20_spill]]  ;;  %s1885_s10 = sld [smem:[#allocation21_spill]] }
  0xa2   : > { %s376_s26 = sand.u32 1, %s1251_s25   ;;  %s1886_s3 = sld [smem:[#allocation37_spill]] }
  0xa3   : > { %s1680_s27 = sshll.u32 %s376_s26, 3 }
  0xa4   : > { %s378_s20 = scalar_lea.vmem [#allocation11], %s1680_s27 }
  0xa7   : > { %p379_p6 = scmp.lt.s32.totalorder %s1884_s29, 3  ;;  %p383_p5 = scmp.eq.s32.totalorder %s1885_s10, 0 }
  0xa8   : > { %p384_p7 = scmp.eq.s32.totalorder %s1884_s29, 0 }
  0xa9   : > { %s1936_s29 = smov (!%p379_p6, %s1884_s29), 3 }
  0xaa   : > { %p385_p8 = pnand %p384_p7, %p383_p5  ;;  %s381_s23 = scalar_lea.vmem %s1886_s3, %s1936_s29 }
  0xab   : > { %v390_v0 = vld [vmem:[#allocation8] sm:$0xff] (!%p385_p8)  ;;  %v391_v1 = vld [vmem:[#allocation8 + $0x8] sm:$0xff] (!%p385_p8)  ;;  %v392_v2 = vld [vmem:[#allocation8 + $0x10] sm:$0xff] (!%p385_p8)  ;;  %v1315_v3 = vmov (!%p385_p8), 0.0|0.0   ;;  %vm1316_vm0 = vmmov (!%p385_p8), 0   ;;  %v1317_v6 = vmov (!%p385_p8), 0.0  }
  0xac   : > { %388 = sbr.rel (%p385_p8) target bundleno = 585 (0x249), region = 64  ;;  %855 = vmatprep.subr.bf16.mxu0 (!%p385_p8), %v1315_v3  ;;  %v856_v4 = vpack.c.bf16 (!%p385_p8), %v391_v1, %v390_v0  ;;  %v393_v5 = vld [vmem:[#allocation8 + $0x18] sm:$0xff] (!%p385_p8)  ;;  %841 = vmatprep.mubr.msk.f32.mxu0 (!%p385_p8), %vm1316_vm0, %v1317_v6  ;;  %vm513_vm1 = vcmask (!%p385_p8), 7168   ;;  %v1318_v7 = vmov (!%p385_p8), -inf   ;;  %vm401_vm2 = vcmask (!%p385_p8), 261120   ;;  %s1887_s15 = sld [smem:[#allocation33_spill]] (!%p385_p8) }
  0xad   : > { %514 = vst.msk [vmem:[#allocation3] sm:$0xff] (!%p385_p8), %vm513_vm1, %v1318_v7  ;;  %515 = vst.msk [vmem:[#allocation4] sm:$0xff] (!%p385_p8), %vm513_vm1, %v1317_v6  ;;  %v859_v8 = vpack.c.bf16 (!%p385_p8), %v393_v5, %v392_v2  ;;  %v389_v9 = vld [vmem:[%s327_s7] sm:$0xff] (!%p385_p8)  ;;  %s1888_s22 = sld [smem:[#allocation34_spill]] (!%p385_p8)  ;;  %s1889_s7 = sld [smem:[#allocation35_spill]] (!%p385_p8) }
  0xae   : > { %857 = vmatpush3.bf16.msra.mxu0 (!%p385_p8), %v856_v4 }
  0xaf   : > { %858 = vmatprep.subr.bf16.mxu0 (!%p385_p8), %v1315_v3 }
  0xb2   : > { %860 = vmatpush3.bf16.msra.mxu0 (!%p385_p8), %v859_v8  ;;  %v809_v10 = vld [vmem:[%s1887_s15] ss:$0 sm:$0xff] (!%p385_p8) }
  0xb3   : > { %v811_v32 = vld [vmem:[%s1888_s22] ss:$0 sm:$0xff] }
  0xb4   : > { %v812_v34 = vld [vmem:[%s1889_s7] ss:$0 sm:$0xff] }
  0xb5   : > { %842 = vmatmul.mubr.msk.f32.vlgmr.msra.gmra.mrb[0].mxu0 %vm401_vm2, %v389_v9 }
 0x188   : > { %v471_v11 = vpop.f32.mrb[0].mxu0 }
 0x189   : > { %v472_v12 = vadd.f32 %v809_v10, %v471_v11  ;;  %v843_v13 = vpop.f32.mrb[1].mxu0 }
 0x18b   : > { %v476_v14 = vmul.f32 0.70710677, %v472_v12  ;;  %v475_v16 = vmul.f32 0.5, %v472_v12 }
 0x18d   : > { %1037 = verf.f32 %v476_v14 }
 0x197   : > { %v1038_v15 = vpop.eup %1037 }
 0x198   : > { %v478_v17 = vadd.f32 1.0, %v1038_v15 }
 0x19a   : > { %v479_v18 = vmul.f32 %v478_v17, %v475_v16 }
 0x19c   : > { %v480_v19 = vsel %vm401_vm2, %v479_v18, 0.0  ;;  %v484_v20 = vmul.f32 %v479_v18, %v479_v18 }
 0x19d   : > { %481 = vadd.xlane.f32.xlu0 %v480_v19 }
 0x19e   : > { %v485_v21 = vsel %vm401_vm2, %v484_v20, 0.0 }
 0x1a1   : > { %486 = vadd.xlane.f32.xlu0 %v485_v21 }
 0x22a   : > { %v482_v22 = vpop.xlane.xlu0 %481 }
 0x22b   : > { %v483_v23 = vmul.f32 0.03125, %v482_v22 }
 0x22d   : > { %v489_v25 = vmul.f32 %v483_v23, %v483_v23  ;;  %v492_v30 = vsub.f32 %v479_v18, %v483_v23 }
 0x22e   : > { %v487_v24 = vpop.xlane.xlu0 %486 }
 0x22f   : > { %v488_v26 = vmul.f32 0.03125, %v487_v24 }
 0x231   : > { %v490_v27 = vsub.f32 %v488_v26, %v489_v25 }
 0x233   : > { %v491_v28 = vmax.f32 %v490_v27, 0.0 }
 0x235   : > { %v493_v29 = vadd.f32 1e-12, %v491_v28 }
 0x237   : > { %1039 = vrsqrt.f32 %v493_v29 }
 0x241   : > { %v1040_v31 = vpop.eup %1039 }
 0x242   : > { %v495_v33 = vmul.f32 %v1040_v31, %v492_v30 }
 0x244   : > { %v503_v35 = vmul.f32 %v811_v32, %v495_v33 }
 0x246   : > { %v511_v36 = vadd.f32 %v812_v34, %v503_v35 }
 0x248   : > { %512 = vst.msk [vmem:[#allocation2] sm:$0xff] %vm401_vm2, %v511_v36 }
 0x249 PF: > { %v517_v37 = vld [vmem:[%s1670_s6] sm:$0xff]  ;;  %v518_v38 = vld [vmem:[%s1670_s6 + $0x8] sm:$0xff]  ;;  %v519_v39 = vld [vmem:[%s1670_s6 + $0x10] sm:$0xff]  ;;  %v1319_v40 = vmov 0.0|0.0   ;;  %vm1320_vm3 = vmmov 0   ;;  %v1321_v43 = vmov 0.0  }
 0x24a   : > { %861 = vmatprep.subr.bf16.mxu0 %v1319_v40  ;;  %v862_v41 = vpack.c.bf16 %v518_v38, %v517_v37  ;;  %v520_v42 = vld [vmem:[%s1670_s6 + $0x18] sm:$0xff]  ;;  %852 = vmatprep.mubr.msk.f32.mxu0 %vm1320_vm3, %v1321_v43  ;;  %vm528_vm4 = vcmask 261120   ;;  %s1891_s19 = sld [smem:[#allocation21_spill]] }
 0x24b   : > { %v865_v44 = vpack.c.bf16 %v520_v42, %v519_v39  ;;  %v813_v46 = vld [vmem:[%s381_s23] ss:$0 sm:$0xff] }
 0x24c   : > { %863 = vmatpush3.bf16.msra.mxu0 %v862_v41 }
 0x24d   : > { %864 = vmatprep.subr.bf16.mxu0 %v1319_v40 }
 0x24f   : > { %v516_v45 = vld [vmem:[#allocation2] sm:$0xff] }
 0x250   : > { %866 = vmatpush3.bf16.msra.mxu0 %v865_v44  ;;  %p815_p0 = scmp.ne.s32.totalorder %s1891_s19, 0 }
 0x251   : > { %v1322_v50 = vmov (!%p815_p0), 0   ;;  %v605_v51 = vld [vmem:[#allocation3] sm:$0xff] (!%p815_p0)  ;;  %vm625_vm5 = vcmask (!%p815_p0), 7168   ;;  %v609_v61 = vld [vmem:[#allocation4] sm:$0xff] (!%p815_p0)  ;;  %s1892_s6 = sld [smem:[#allocation20_spill]] (!%p815_p0) }
 0x252   : > { %1041 = vset.pattern.permute.xlu0 (!%p815_p0), %v1322_v50 }
 0x253   : > { %853 = vmatmul.mubr.msk.f32.vlgmr.msra.gmra.mrb[0].mxu0 %vm528_vm4, %v516_v45 }
 0x257   : > { %p816_p1 = scmp.ne.s32.totalorder (!%p815_p0), %s1892_s6, 3 }
 0x321   : > { %604 = sbr.rel (%p815_p0) target bundleno = 1264 (0x4f0), region = 68 }
 0x326   : > { %v598_v47 = vpop.f32.mrb[0].mxu0 }
 0x327   : > { %v599_v48 = vadd.f32 %v813_v46, %v598_v47  ;;  %v854_v49 = vpop.f32.mrb[1].mxu0 }
 0x329   : > { %606 = vmax.xlane.f32.xlu0 %v599_v48 }
 0x3b6   : > { %v607_v52 = vpop.xlane.xlu0 %606 }
 0x3b7   : > { %v608_v53 = vmax.f32 %v605_v51, %v607_v52 }
 0x3b9   : > { %v610_v54 = vsub.f32 %v605_v51, %v608_v53  ;;  %627 = vst.msk [vmem:[#allocation3] sm:$0xff] %vm625_vm5, %v608_v53  ;;  %616 = vperm.xlu0 %1041, %v608_v53  }
 0x3bb   : > { %v611_v59 = vmul.f32 1.442695, %v610_v54 }
 0x3c0   : > { %v632_v3 = vld [vmem:[#allocation3] sm:$0xff] (!%p816_p1) }
 0x438   : > { %v617_v55 = vpop.permute.xlu0 %616 }
 0x439   : > { %v619_v56 = vsub.f32 %v599_v48, %v617_v55 }
 0x43b   : > { %v620_v57 = vmul.f32 1.442695, %v619_v56 }
 0x43d   : > { %1042 = vpow2.f32 %v620_v57 }
 0x43e   : > { %1044 = vpow2.f32 %v611_v59 }
 0x447   : > { %v1043_v58 = vpop.eup %1042 }
 0x448   : > { %622 = vadd.xlane.f32.xlu1 %v1043_v58  ;;  %v1045_v60 = vpop.eup %1044 }
 0x449   : > { %v613_v62 = vmul.f32 %v1045_v60, %v609_v61 }
 0x4d2   : > { %631 = sbr.rel (%p816_p1) target bundleno = 1264 (0x4f0), region = 72 }
 0x4d5   : > { %v623_v63 = vpop.xlane.xlu1 %622 }
 0x4d6   : > { %v624_v0 = vadd.f32 %v623_v63, %v613_v62 }
 0x4d8   : > { %626 = vst.msk [vmem:[#allocation4] sm:$0xff] %vm625_vm5, %v624_v0 }
 0x4df   : > { %v633_v1 = vld [vmem:[#allocation4] sm:$0xff] }
 0x4e0   : > { %1046 = vlog2.f32 %v633_v1 }
 0x4ea   : > { %v1047_v2 = vpop.eup %1046 }
 0x4eb   : > { %v635_v4 = vmul.f32 0.6931472, %v1047_v2 }
 0x4ed   : > { %v636_v5 = vadd.f32 %v635_v4, %v632_v3 }
 0x4ef   : > { %637 = vst.msk [vmem:[#allocation3] sm:$0xff] %vm625_vm5, %v636_v5 }
 0x4f0 PF: > { %s1893_s29 = sld [smem:[#allocation21_spill]] }
 0x4f6   : > { %p817_p13 = scmp.ne.s32.totalorder %s1893_s29, 1 }
 0x4f7   : > { %v642_v6 = vld [vmem:[#allocation3] sm:$0xff] (!%p817_p13)  ;;  %v1323_v7 = vmov (!%p817_p13), 0  }
 0x4f8   : > { %641 = sbr.rel (%p817_p13) target bundleno = 1404 (0x57c), region = 76  ;;  %1048 = vset.pattern.permute.xlu0 (!%p817_p13), %v1323_v7 }
 0x4f9   : > { %645 = vperm.xlu0 (!%p817_p13), %1048, %v642_v6  }
 0x578   : > { %v646_v8 = vpop.permute.xlu0 %645 }
 0x579   : > { %v648_v9 = vsub.f32 %v599_v48, %v646_v8 }
 0x57b   : > { %649 = vst [vmem:[%s378_s20] sm:$0xff] %v648_v9 }
 0x57c PF: > { %s1894_s9 = sld [smem:[#allocation21_spill]]  ;;  %s1895_s3 = sld [smem:[#allocation20_spill]] }
 0x57d   : > { %s1896_s23 = sld [smem:[#allocation22_spill]]  ;;  %s667_s15 = sshll.u32 %s378_s20, 4  ;;  %s1729_s15 = int_to_ptr.vmem [resolvable:$true] %s667_s15 }
 0x57e   : > { %s1897_s5 = sld [smem:[#allocation38_spill]]  ;;  %s651_s18 = scalar_lea.sflag [#allocation7], %s376_s26 }
 0x57f   : > { %s1137_s2 = scalar_lea.vmem %s1729_s15, 128  ;;  %p1898_p11 = scmp.ne.s32.totalorder %s1871_s12, 0 }
 0x580   : > { %p1138_p10 = scmp.ne.s32.totalorder %s1729_s15, %s1137_s2  ;;  %s1324_s27 = smov [#allocation11]  }
 0x581   : > { %s1141_s20 = sshll.u32 %s1324_s27, 4  ;;  %s1142_s20 = int_to_ptr.vmem [resolvable:$false] %s1141_s20 }
 0x582   : > { %s658_s21 = smul.u32 %s1895_s3, %s1894_s9  ;;  %p1139_p12 = pnand %p1138_p10, %p1898_p11 }
 0x583   : > { %s819_s11 = sshll.u32 %s1896_s23, 2  ;;  %s1143_s10 = scalar_lea.vmem %s1142_s20, 256 }
 0x584   : > { %s663_s17 = sadd.s32 %s819_s11, %s658_s21  ;;  %p1140_p2 = pneg %p1139_p12 }
 0x585   : > { %s820_s4 = sshll.u32 %s663_s17, 7  ;;  %p1144_p3 = scmp.lt.s32.totalorder %s1729_s15, %s1142_s20 }
 0x586   : > { %s665_s7 = scalar_lea.hbm %s1897_s5, %s820_s4  ;;  %p1145_p9 = scmp.lt.s32.totalorder %s1143_s10, %s1137_s2 }
 0x588   : > { %p1146_p4 = por %p1145_p9, %p1144_p3 }
 0x58a   : > { %p1147_p6 = pnand %p1146_p4, %p1140_p2 }
 0x58c   : > { %1150 = shalt.err (!%p1147_p6)
}
 0x58d   : > { %s1151_s19 = scalar_lea.hbm %s665_s7, 128  ;;  %s1155_s29 = scalar_lea.hbm %s1897_s5, 1024 }
 0x58e   : > { %p1152_p5 = scmp.ne.s32.totalorder %s665_s7, %s1151_s19  ;;  %p1156_p0 = scmp.lt.u32.totalorder %s665_s7, %s1897_s5 }
 0x58f   : > { %p1157_p1 = scmp.lt.u32.totalorder %s1155_s29, %s1151_s19  ;;  %p1159_p10 = scmp.lt.u32.totalorder %s1151_s19, %s665_s7 }
 0x590   : > { %p1153_p7 = pnand %p1152_p5, %p1898_p11 }
 0x591   : > { %p1158_p13 = por %p1157_p1, %p1156_p0 }
 0x592   : > { %p1154_p8 = pneg %p1153_p7 }
 0x593   : > { %p1160_p12 = por %p1159_p10, %p1158_p13 }
 0x595   : > { %p1161_p2 = pnand %p1160_p12, %p1154_p8 }
 0x597   : > { %1164 = shalt.err (!%p1161_p2)
}
 0x598   : > { %875 = dma.vmem_to_hbm [thread:$0]  (%p1898_p11), %s1729_s15, 128, %s665_s7, %s651_s18  }
 0x599 PF: > { %p895_p3 = scmp.ge.s32.totalorder %s1307_s16, 2  ;;  %s679_s23 = sand.u32 1, %s1247_s24  }
 0x59a   : > { %p1899_p9 = scmp.ne.s32.totalorder %s1872_s30, 0  ;;  %s680_s21 = scalar_lea.sflag [#allocation7], %s679_s23 }
 0x59c   : > { %p889_p4 = pnand %p895_p3, %p1899_p9 }
 0x59e   : > { %1242 = dma.done.wait (!%p889_p4), %s680_s21, 128  }
 0x59f   : > { %1244 = vsyncadd (!%p889_p4), %s680_s21, 4294967168  ;;  %s24_s16 = sadd.s32 1, %s1307_s16   ;;  %s1901_s12 = sld [smem:[#allocation16_spill]] }
 0x5a0   : > { %p1757_p6 = scmp.ge.s32.totalorder %s24_s16, 18   ;;  %s1902_s26 = sld [smem:[#allocation30_spill]] }
 0x5a1   : > { %s1903_s15 = sld [smem:[#allocation18_spill]]  ;;  %s1904_s29 = sld [smem:[#allocation27_spill]] }
 0x5a2   : > { %s1905_s17 = sld [smem:[#allocation19_spill]]  ;;  %s1906_s9 = sld [smem:[#allocation29_spill]] }
 0x5a3   : > { %s1907_s4 = sld [smem:[#allocation23_spill]]  ;;  %s1908_s22 = sld [smem:[#allocation24_spill]] }
 0x5a4   : > { %s1909_s14 = sld [smem:[#allocation25_spill]]  ;;  %s1910_s7 = sld [smem:[#allocation26_spill]] }
 0x5a5   : > { %s1911_s18 = sld [smem:[#allocation28_spill]]  ;;  %s1912_s24 = smov %s1251_s25 }
 0x5a6   : > { %s1914_s25 = smov %s1901_s12  ;;  %s1915_s27 = smov %s1263_s28 }
 0x5a7   : > { %s1916_s28 = smov %s1903_s15  ;;  %s1917_s30 = smov %s1275_s8 }
 0x5a8   : > { %s1918_s8 = smov %s1905_s17  ;;  %s1919_s10 = smov %s1295_s13 }
 0x5a9   : > { %s1920_s11 = smov %s1907_s4  ;;  %s1921_s12 = smov %s1908_s22 }
 0x5aa   : > { %s1922_s13 = smov %s1909_s14  ;;  %s1923_s14 = smov %s1910_s7 }
 0x5ab   : > { %s1924_s15 = smov %s1911_s18  ;;  %23 = sbr.rel (!%p1757_p6) target bundleno = 21 (0x15), region = 127 }
 0x5b2   :  { %685 = vsyncpa [#allocation6], 1 }
 0x5b3   :  { %687 = vsyncpa [#allocation6 + $0x1], 1 }
 0x5b4   :  { %688 = vsyncpa [#allocation9], 1 }
 0x5b5   :  { %689 = vsyncpa [#allocation7], 1 }
 0x5b6   :  { %691 = vsyncpa [#allocation7 + $0x1], 1 }

</bundles_post_ra>
